<compile_context>
chip_gen: v7x
topology: tpu7x:2x2x1
jax: 0.10.0
libtpu: 0.0.40
codegen_flags: <defaults>
</compile_context>

<pallas_src>
import functools

import jax
import jax.numpy as jnp
import numpy as np
from jax.experimental import pallas as pl
from jax.experimental.pallas import tpu as pltpu


def _resblock_kernel(*refs, K, dilation, pad, l_tile, halo_w,
                     has_downsample, compute_dtype):
    """One (batch, L-tile) grid point.

    refs, in order:
      [xh_ref]  (1, C_in, halo_w)   trailing columns of the previous L tile
                                    (present only when halo_w > 0)
      x_ref     (1, C_in, l_tile)   current tile of x
      w1_ref    (K, C_out, C_in)    weight-normed conv1 weight, tap-major
      b1_ref    (C_out, 1)
      w2_ref    (K, C_out, C_out)   weight-normed conv2 weight, tap-major
      b2_ref    (C_out, 1)
      [wd_ref]  (C_out, C_in)       1x1 skip conv (only if has_downsample)
      [bd_ref]  (C_out, 1)
      o_ref     (1, C_out, l_tile)
    """
    it = iter(refs)
    xh_ref = next(it) if halo_w > 0 else None
    x_ref = next(it)
    w1_ref = next(it)
    b1_ref = next(it)
    w2_ref = next(it)
    b2_ref = next(it)
    wd_ref = next(it) if has_downsample else None
    bd_ref = next(it) if has_downsample else None
    o_ref = next(it)

    is_first = pl.program_id(1) == 0
    cur = x_ref[0]                                    # (C_in, l_tile)
    c_in = cur.shape[0]
    c_out = o_ref.shape[1]

    # ---- causal halo: the 2*pad x columns preceding this tile -------------
    # (zeros on the first tile == conv1's left zero padding in the module)
    if halo_w > 0:
        halo = xh_ref[0][:, halo_w - 2 * pad:]        # (C_in, 2*pad)
        halo = jnp.where(is_first, jnp.zeros_like(halo), halo)
    else:                                             # single-tile case
        halo = jnp.zeros((c_in, 2 * pad), cur.dtype)
    xw = jnp.concatenate([halo, cur], axis=-1)        # (C_in, l_tile + 2*pad)

    # ---- conv1 (dilated, causal) + bias + ReLU; kept in registers ---------
    n1 = l_tile + pad                   # extra left columns feed conv2's taps
    h1 = jnp.zeros((c_out, n1), jnp.float32)
    for k in range(K):                  # static unrolled taps
        s = k * dilation
        h1 = h1 + jnp.dot(w1_ref[k], xw[:, s:s + n1],
                          preferred_element_type=jnp.float32)
    h1 = jnp.maximum(h1 + b1_ref[...], 0.0)
    # conv2's own left zero padding: columns at global time < 0 are exactly
    # zero (NOT relu(b1)); this only applies on the first L tile.
    col = jax.lax.broadcasted_iota(jnp.int32, h1.shape, 1)
    h1 = jnp.where(jnp.logical_and(is_first, col < pad), 0.0, h1)
    # dropout1: identity in eval mode
    h1c = h1.astype(compute_dtype)

    # ---- conv2 (dilated, causal) + bias + ReLU -----------------------------
    h2 = jnp.zeros((c_out, l_tile), jnp.float32)
    for k in range(K):
        s = k * dilation
        h2 = h2 + jnp.dot(w2_ref[k], h1c[:, s:s + l_tile],
                          preferred_element_type=jnp.float32)
    h2 = jnp.maximum(h2 + b2_ref[...], 0.0)
    # dropout2: identity in eval mode

    # ---- skip connection + final ReLU --------------------------------------
    if has_downsample:
        res = jnp.dot(wd_ref[...], cur,
                      preferred_element_type=jnp.float32) + bd_ref[...]
    else:
        res = cur.astype(jnp.float32)   # identity skip: plain VPU add
    o_ref[0] = jnp.maximum(h2 + res, 0.0).astype(o_ref.dtype)


def _choose_tiling(L, pad, max_l_tile):
    """Returns (l_tile, num_tiles, padded_L, halo_block_width)."""
    if L <= max_l_tile:
        return L, 1, L, 0                      # single tile: block == full L
    halo_w = -(-2 * pad // 128) * 128          # lane-aligned halo block
    l_tile = -(-max(max_l_tile, halo_w) // halo_w) * halo_w
    num = -(-L // l_tile)
    return l_tile, num, num * l_tile, halo_w


def resblock_forward(x, w1, b1, w2, b2, wd=None, bd=None, *, kernel_size,
                     stride, dilation, padding,
                     compute_dtype=jnp.bfloat16, max_l_tile=1024):
    """x: (N, C_in, L); w1: (C_out, C_in, K); w2: (C_out, C_out, K);
    wd: (C_out, C_in) or None for identity skip; biases: (C_out,).
    Returns (N, C_out, L) in x.dtype."""
    assert stride == 1, "residual add requires stride == 1"
    assert padding == dilation * (kernel_size - 1) and padding > 0, \
        "causal TCN padding = dilation * (kernel_size - 1) required"
    N, C_in, L = x.shape
    C_out = w1.shape[0]
    K, pad = kernel_size, padding
    has_downsample = wd is not None
    if not has_downsample:
        assert C_in == C_out, "identity skip requires n_inputs == n_outputs"

    l_tile, n_tiles, L_p, halo_w = _choose_tiling(L, pad, max_l_tile)
    out_dtype = x.dtype

    # Only a right pad (to a tile multiple) may be needed; causal left padding
    # is handled in-kernel via the halo block + masking.
    xt = x if L_p == L else jnp.pad(x, ((0, 0), (0, 0), (0, L_p - L)))
    xt = xt.astype(compute_dtype)

    w1_t = jnp.transpose(w1, (2, 0, 1)).astype(compute_dtype)  # (K, C_out, C_in)
    w2_t = jnp.transpose(w2, (2, 0, 1)).astype(compute_dtype)  # (K, C_out, C_out)
    b1_2 = b1.reshape(C_out, 1).astype(jnp.float32)
    b2_2 = b2.reshape(C_out, 1).astype(jnp.float32)

    inputs, in_specs = [], []
    if halo_w > 0:
        r = l_tile // halo_w
        inputs.append(xt)
        in_specs.append(pl.BlockSpec(
            (1, C_in, halo_w),
            lambda n, t, r=r: (n, 0, jnp.maximum(t * r - 1, 0))))
    inputs += [xt, w1_t, b1_2, w2_t, b2_2]
    in_specs += [
        pl.BlockSpec((1, C_in, l_tile), lambda n, t: (n, 0, t)),
        pl.BlockSpec((K, C_out, C_in), lambda n, t: (0, 0, 0)),
        pl.BlockSpec((C_out, 1), lambda n, t: (0, 0)),
        pl.BlockSpec((K, C_out, C_out), lambda n, t: (0, 0, 0)),
        pl.BlockSpec((C_out, 1), lambda n, t: (0, 0)),
    ]
    if has_downsample:
        inputs += [wd.astype(compute_dtype),
                   bd.reshape(C_out, 1).astype(jnp.float32)]
        in_specs += [pl.BlockSpec((C_out, C_in), lambda n, t: (0, 0)),
                     pl.BlockSpec((C_out, 1), lambda n, t: (0, 0))]

    kernel = functools.partial(
        _resblock_kernel, K=K, dilation=dilation, pad=pad, l_tile=l_tile,
        halo_w=halo_w, has_downsample=has_downsample,
        compute_dtype=compute_dtype)

    # Advisory cost + explicit VMEM budget (sized so a v5e/v6e tile config
    # still fits v7x's smaller 64 MiB VMEM with double-buffering headroom).
    in_item = jnp.dtype(compute_dtype).itemsize
    out_item = jnp.dtype(out_dtype).itemsize
    flops = 2 * N * L_p * (K * C_out * C_in + K * C_out * C_out
                           + (C_out * C_in if has_downsample else 0))
    weight_elems = w1_t.size + w2_t.size + (C_out * C_in if has_downsample else 0)
    bytes_accessed = int(
        N * C_in * (L_p + n_tiles * halo_w) * in_item
        + N * C_out * L_p * out_item
        + weight_elems * in_item + 3 * C_out * 4)
    blk_bytes = (C_in * (l_tile + halo_w) * in_item
                 + C_out * l_tile * out_item
                 + weight_elems * in_item + 3 * C_out * 4)
    vmem_limit = int(min(max(4 * blk_bytes + (8 << 20), 16 << 20), 48 << 20))

    out = pl.pallas_call(
        kernel,
        out_shape=jax.ShapeDtypeStruct((N, C_out, L_p), out_dtype),
        grid_spec=pltpu.PrefetchScalarGridSpec(
            num_scalar_prefetch=0,
            grid=(N, n_tiles),
            in_specs=in_specs,
            out_specs=pl.BlockSpec((1, C_out, l_tile), lambda n, t: (n, 0, t)),
        ),
        compiler_params=pltpu.CompilerParams(
            dimension_semantics=("parallel", "parallel"),
            vmem_limit_bytes=vmem_limit),
        cost_estimate=pl.CostEstimate(
            flops=int(flops), transcendentals=0,
            bytes_accessed=bytes_accessed),
    )(*inputs)
    return out if L_p == L else out[:, :, :L]


def weight_norm_weight(v, g):
    """PyTorch weight_norm (dim=0): W = g * v / ||v||_2 over dims (1, 2)."""
    norm = jnp.sqrt(jnp.sum(v * v, axis=(1, 2), keepdims=True))
    return g[:, None, None] * v / norm


def _ref_forward(x, w1, b1, w2, b2, wd, bd, *, dilation, padding,
                 cast_dtype=jnp.float32):
    """Pure-JAX reference (conv+chomp+relu twice; skip; final relu).
    cast_dtype mirrors the kernel's matmul operand dtype (f32 accumulation)
    so both the exact f32 path and the bf16 MXU path can be checked tightly."""
    L = x.shape[2]

    def conv1d(inp, w, b, dil, p):
        y = jax.lax.conv_general_dilated(
            inp.astype(cast_dtype), w.astype(cast_dtype),
            window_strides=(1,), padding=[(p, p)], rhs_dilation=(dil,),
            dimension_numbers=("NCH", "OIH", "NCH"),
            preferred_element_type=jnp.float32,
            precision=jax.lax.Precision.HIGHEST)
        return y + b[None, :, None].astype(jnp.float32)

    h = jnp.maximum(conv1d(x, w1, b1, dilation, padding)[:, :, :L], 0.0)
    h = jnp.maximum(conv1d(h, w2, b2, dilation, padding)[:, :, :L], 0.0)
    if wd is None:
        res = x.astype(cast_dtype).astype(jnp.float32)
    else:
        res = conv1d(x, wd[:, :, None], bd, 1, 0)
    return jnp.maximum(h + res, 0.0)


def _make_params(key, c_in, c_out, K, with_downsample):
    ks = jax.random.split(key, 8)
    v1 = 0.01 * jax.random.normal(ks[0], (c_out, c_in, K), jnp.float32)
    g1 = 0.5 + jax.random.uniform(ks[1], (c_out,), jnp.float32)
    b1 = 0.05 * jax.random.normal(ks[2], (c_out,), jnp.float32)
    v2 = 0.01 * jax.random.normal(ks[3], (c_out, c_out, K), jnp.float32)
    g2 = 0.5 + jax.random.uniform(ks[4], (c_out,), jnp.float32)
    b2 = 0.05 * jax.random.normal(ks[5], (c_out,), jnp.float32)
    w1 = weight_norm_weight(v1, g1)
    w2 = weight_norm_weight(v2, g2)
    if with_downsample:
        wd = 0.01 * jax.random.normal(ks[6], (c_out, c_in), jnp.float32)
        bd = 0.05 * jax.random.normal(ks[7], (c_out,), jnp.float32)
    else:
        wd = bd = None
    return w1, b1, w2, b2, wd, bd


if __name__ == "__main__":
    key = jax.random.PRNGKey(0)
    k_pA, k_xA, k_pB, k_xB, k_pC, k_xC = jax.random.split(key, 6)

    # ---- Case A: downsample skip (C_in != C_out), single L tile -----------
    N, C_in, C_out, L, K, d = 2, 4, 8, 16, 3, 2
    pad = (K - 1) * d
    pA = _make_params(k_pA, C_in, C_out, K, True)
    xA = jax.random.normal(k_xA, (N, C_in, L), jnp.float32)

    outA_f32 = jax.block_until_ready(resblock_forward(
        xA, *pA, kernel_size=K, stride=1, dilation=d, padding=pad,
        compute_dtype=jnp.float32))
    refA_f32 = _ref_forward(xA, *pA, dilation=d, padding=pad)
    np.testing.assert_allclose(np.asarray(outA_f32), np.asarray(refA_f32),
                               rtol=1e-2, atol=1e-2)

    outA_bf16 = jax.block_until_ready(resblock_forward(
        xA, *pA, kernel_size=K, stride=1, dilation=d, padding=pad,
        compute_dtype=jnp.bfloat16))
    refA_bf16 = _ref_forward(xA, *pA, dilation=d, padding=pad,
                             cast_dtype=jnp.bfloat16)
    np.testing.assert_allclose(np.asarray(outA_bf16), np.asarray(refA_bf16),
                               rtol=5e-3, atol=5e-3)

    # ---- Case B: identity skip (C_in == C_out), no downsample matmul ------
    pB = _make_params(k_pB, C_out, C_out, K, False)
    xB = jax.random.normal(k_xB, (N, C_out, L), jnp.float32)
    outB = jax.block_until_ready(resblock_forward(
        xB, *pB, kernel_size=K, stride=1, dilation=d, padding=pad,
        compute_dtype=jnp.float32))
    refB = _ref_forward(xB, *pB, dilation=d, padding=pad)
    np.testing.assert_allclose(np.asarray(outB), np.asarray(refB),
                               rtol=1e-2, atol=1e-2)

    # ---- Case C: longer sequence -> multi-tile path with causal halo ------
    Lc = 300
    pC = _make_params(k_pC, C_in, C_out, K, True)
    xC = jax.random.normal(k_xC, (1, C_in, Lc), jnp.float32)
    outC = jax.block_until_ready(resblock_forward(
        xC, *pC, kernel_size=K, stride=1, dilation=d, padding=pad,
        compute_dtype=jnp.bfloat16, max_l_tile=128))
    refC = _ref_forward(xC, *pC, dilation=d, padding=pad,
                        cast_dtype=jnp.bfloat16)
    np.testing.assert_allclose(np.asarray(outC), np.asarray(refC),
                               rtol=5e-3, atol=5e-3)

    print("KERNEL_OK")
</pallas_src>

<mosaic_0001>
module attributes {stable_mosaic.version = 11 : i64} {
  func.func @_resblock_kernel(%arg0: i32, %arg1: i32, %arg2: memref<1x4x16xf32, #tpu.memory_space<vmem>>, %arg3: memref<3x8x4xf32, #tpu.memory_space<vmem>>, %arg4: memref<8x1xf32, #tpu.memory_space<vmem>>, %arg5: memref<3x8x8xf32, #tpu.memory_space<vmem>>, %arg6: memref<8x1xf32, #tpu.memory_space<vmem>>, %arg7: memref<8x4xf32, #tpu.memory_space<vmem>>, %arg8: memref<8x1xf32, #tpu.memory_space<vmem>>, %arg9: memref<1x8x16xf32, #tpu.memory_space<vmem>>) attributes {dimension_semantics = [#tpu.dimension_semantics<parallel>, #tpu.dimension_semantics<parallel>], iteration_bounds = array<i64: 2, 1>, scalar_prefetch = 0 : i64, scratch_operands = 0 : i64, tpu.core_type = #tpu.core_type<tc>, window_params = [{transform_indices = @transform_0, window_bounds = array<i64: 1, 4, 16>}, {pipeline_mode = #tpu.pipeline_mode<synchronous>, transform_indices = @transform_1, window_bounds = array<i64: 3, 8, 4>}, {pipeline_mode = #tpu.pipeline_mode<synchronous>, transform_indices = @transform_2, window_bounds = array<i64: 8, 1>}, {pipeline_mode = #tpu.pipeline_mode<synchronous>, transform_indices = @transform_3, window_bounds = array<i64: 3, 8, 8>}, {pipeline_mode = #tpu.pipeline_mode<synchronous>, transform_indices = @transform_4, window_bounds = array<i64: 8, 1>}, {pipeline_mode = #tpu.pipeline_mode<synchronous>, transform_indices = @transform_5, window_bounds = array<i64: 8, 4>}, {pipeline_mode = #tpu.pipeline_mode<synchronous>, transform_indices = @transform_6, window_bounds = array<i64: 8, 1>}, {transform_indices = @transform_7, window_bounds = array<i64: 1, 8, 16>}]} {
    %c0_i32 = arith.constant 0 : i32
    %0 = arith.cmpi eq, %arg1, %c0_i32 : i32
    %c0 = arith.constant 0 : index
    %c0_0 = arith.constant 0 : index
    %c0_1 = arith.constant 0 : index
    %1 = vector.load %arg2[%c0, %c0_0, %c0_1] : memref<1x4x16xf32, #tpu.memory_space<vmem>>, vector<1x4x16xf32>
    %2 = vector.shape_cast %1 : vector<1x4x16xf32> to vector<4x16xf32>
    %cst = arith.constant 0.000000e+00 : f32
    %3 = vector.broadcast %cst : f32 to vector<4x8xf32>
    %4 = tpu.concatenate %3, %2 in 1 : vector<4x8xf32>, vector<4x16xf32> -> vector<4x24xf32>
    %cst_2 = arith.constant 0.000000e+00 : f32
    %5 = vector.broadcast %cst_2 : f32 to vector<8x20xf32>
    %c0_3 = arith.constant 0 : index
    %c0_4 = arith.constant 0 : index
    %c0_5 = arith.constant 0 : index
    %6 = vector.load %arg3[%c0_3, %c0_4, %c0_5] : memref<3x8x4xf32, #tpu.memory_space<vmem>>, vector<1x8x4xf32>
    %7 = vector.shape_cast %6 : vector<1x8x4xf32> to vector<8x4xf32>
    %8 = vector.extract_strided_slice %4 {offsets = [0, 0], sizes = [4, 20], strides = [1, 1]} : vector<4x24xf32> to vector<4x20xf32>
    %cst_6 = arith.constant dense<0.000000e+00> : vector<8x20xf32>
    %9 = tpu.matmul %7, %8, %cst_6 {dimension_numbers = #tpu.dot_dimension_numbers<[1], [0], [0], [1], [0, 0, 1, 1], [], []>} : vector<8x4xf32>, vector<4x20xf32>, vector<8x20xf32> -> vector<8x20xf32>
    %10 = arith.addf %5, %9 : vector<8x20xf32>
    %c1 = arith.constant 1 : index
    %c0_7 = arith.constant 0 : index
    %c0_8 = arith.constant 0 : index
    %11 = vector.load %arg3[%c1, %c0_7, %c0_8] : memref<3x8x4xf32, #tpu.memory_space<vmem>>, vector<1x8x4xf32>
    %12 = vector.shape_cast %11 : vector<1x8x4xf32> to vector<8x4xf32>
    %13 = vector.extract_strided_slice %4 {offsets = [0, 2], sizes = [4, 20], strides = [1, 1]} : vector<4x24xf32> to vector<4x20xf32>
    %cst_9 = arith.constant dense<0.000000e+00> : vector<8x20xf32>
    %14 = tpu.matmul %12, %13, %cst_9 {dimension_numbers = #tpu.dot_dimension_numbers<[1], [0], [0], [1], [0, 0, 1, 1], [], []>} : vector<8x4xf32>, vector<4x20xf32>, vector<8x20xf32> -> vector<8x20xf32>
    %15 = arith.addf %10, %14 : vector<8x20xf32>
    %c2 = arith.constant 2 : index
    %c0_10 = arith.constant 0 : index
    %c0_11 = arith.constant 0 : index
    %16 = vector.load %arg3[%c2, %c0_10, %c0_11] : memref<3x8x4xf32, #tpu.memory_space<vmem>>, vector<1x8x4xf32>
    %17 = vector.shape_cast %16 : vector<1x8x4xf32> to vector<8x4xf32>
    %18 = vector.extract_strided_slice %4 {offsets = [0, 4], sizes = [4, 20], strides = [1, 1]} : vector<4x24xf32> to vector<4x20xf32>
    %cst_12 = arith.constant dense<0.000000e+00> : vector<8x20xf32>
    %19 = tpu.matmul %17, %18, %cst_12 {dimension_numbers = #tpu.dot_dimension_numbers<[1], [0], [0], [1], [0, 0, 1, 1], [], []>} : vector<8x4xf32>, vector<4x20xf32>, vector<8x20xf32> -> vector<8x20xf32>
    %20 = arith.addf %15, %19 : vector<8x20xf32>
    %c0_13 = arith.constant 0 : index
    %c0_14 = arith.constant 0 : index
    %21 = vector.load %arg4[%c0_13, %c0_14] : memref<8x1xf32, #tpu.memory_space<vmem>>, vector<8x1xf32>
    %22 = vector.broadcast %21 : vector<8x1xf32> to vector<8x20xf32>
    %23 = arith.addf %20, %22 : vector<8x20xf32>
    %cst_15 = arith.constant 0.000000e+00 : f32
    %24 = vector.broadcast %cst_15 : f32 to vector<8x20xf32>
    %25 = arith.maximumf %23, %24 : vector<8x20xf32>
    %26 = tpu.iota {dimensions = array<i32: 1>} : vector<8x20xi32>
    %c4_i32 = arith.constant 4 : i32
    %27 = vector.broadcast %c4_i32 : i32 to vector<8x20xi32>
    %28 = arith.cmpi slt, %26, %27 : vector<8x20xi32>
    %29 = vector.broadcast %0 : i1 to vector<8x20xi1>
    %30 = arith.andi %29, %28 : vector<8x20xi1>
    %cst_16 = arith.constant 0.000000e+00 : f32
    %31 = vector.broadcast %cst_16 : f32 to vector<8x20xf32>
    %32 = arith.select %30, %31, %25 : vector<8x20xi1>, vector<8x20xf32>
    %cst_17 = arith.constant 0.000000e+00 : f32
    %33 = vector.broadcast %cst_17 : f32 to vector<8x16xf32>
    %c0_18 = arith.constant 0 : index
    %c0_19 = arith.constant 0 : index
    %c0_20 = arith.constant 0 : index
    %34 = vector.load %arg5[%c0_18, %c0_19, %c0_20] : memref<3x8x8xf32, #tpu.memory_space<vmem>>, vector<1x8x8xf32>
    %35 = vector.shape_cast %34 : vector<1x8x8xf32> to vector<8x8xf32>
    %36 = vector.extract_strided_slice %32 {offsets = [0, 0], sizes = [8, 16], strides = [1, 1]} : vector<8x20xf32> to vector<8x16xf32>
    %cst_21 = arith.constant dense<0.000000e+00> : vector<8x16xf32>
    %37 = tpu.matmul %35, %36, %cst_21 {dimension_numbers = #tpu.dot_dimension_numbers<[1], [0], [0], [1], [0, 0, 1, 1], [], []>} : vector<8x8xf32>, vector<8x16xf32>, vector<8x16xf32> -> vector<8x16xf32>
    %38 = arith.addf %33, %37 : vector<8x16xf32>
    %c1_22 = arith.constant 1 : index
    %c0_23 = arith.constant 0 : index
    %c0_24 = arith.constant 0 : index
    %39 = vector.load %arg5[%c1_22, %c0_23, %c0_24] : memref<3x8x8xf32, #tpu.memory_space<vmem>>, vector<1x8x8xf32>
    %40 = vector.shape_cast %39 : vector<1x8x8xf32> to vector<8x8xf32>
    %41 = vector.extract_strided_slice %32 {offsets = [0, 2], sizes = [8, 16], strides = [1, 1]} : vector<8x20xf32> to vector<8x16xf32>
    %cst_25 = arith.constant dense<0.000000e+00> : vector<8x16xf32>
    %42 = tpu.matmul %40, %41, %cst_25 {dimension_numbers = #tpu.dot_dimension_numbers<[1], [0], [0], [1], [0, 0, 1, 1], [], []>} : vector<8x8xf32>, vector<8x16xf32>, vector<8x16xf32> -> vector<8x16xf32>
    %43 = arith.addf %38, %42 : vector<8x16xf32>
    %c2_26 = arith.constant 2 : index
    %c0_27 = arith.constant 0 : index
    %c0_28 = arith.constant 0 : index
    %44 = vector.load %arg5[%c2_26, %c0_27, %c0_28] : memref<3x8x8xf32, #tpu.memory_space<vmem>>, vector<1x8x8xf32>
    %45 = vector.shape_cast %44 : vector<1x8x8xf32> to vector<8x8xf32>
    %46 = vector.extract_strided_slice %32 {offsets = [0, 4], sizes = [8, 16], strides = [1, 1]} : vector<8x20xf32> to vector<8x16xf32>
    %cst_29 = arith.constant dense<0.000000e+00> : vector<8x16xf32>
    %47 = tpu.matmul %45, %46, %cst_29 {dimension_numbers = #tpu.dot_dimension_numbers<[1], [0], [0], [1], [0, 0, 1, 1], [], []>} : vector<8x8xf32>, vector<8x16xf32>, vector<8x16xf32> -> vector<8x16xf32>
    %48 = arith.addf %43, %47 : vector<8x16xf32>
    %c0_30 = arith.constant 0 : index
    %c0_31 = arith.constant 0 : index
    %49 = vector.load %arg6[%c0_30, %c0_31] : memref<8x1xf32, #tpu.memory_space<vmem>>, vector<8x1xf32>
    %50 = vector.broadcast %49 : vector<8x1xf32> to vector<8x16xf32>
    %51 = arith.addf %48, %50 : vector<8x16xf32>
    %cst_32 = arith.constant 0.000000e+00 : f32
    %52 = vector.broadcast %cst_32 : f32 to vector<8x16xf32>
    %53 = arith.maximumf %51, %52 : vector<8x16xf32>
    %c0_33 = arith.constant 0 : index
    %c0_34 = arith.constant 0 : index
    %54 = vector.load %arg7[%c0_33, %c0_34] : memref<8x4xf32, #tpu.memory_space<vmem>>, vector<8x4xf32>
    %cst_35 = arith.constant dense<0.000000e+00> : vector<8x16xf32>
    %55 = tpu.matmul %54, %2, %cst_35 {dimension_numbers = #tpu.dot_dimension_numbers<[1], [0], [0], [1], [0, 0, 1, 1], [], []>} : vector<8x4xf32>, vector<4x16xf32>, vector<8x16xf32> -> vector<8x16xf32>
    %c0_36 = arith.constant 0 : index
    %c0_37 = arith.constant 0 : index
    %56 = vector.load %arg8[%c0_36, %c0_37] : memref<8x1xf32, #tpu.memory_space<vmem>>, vector<8x1xf32>
    %57 = vector.broadcast %56 : vector<8x1xf32> to vector<8x16xf32>
    %58 = arith.addf %55, %57 : vector<8x16xf32>
    %59 = arith.addf %53, %58 : vector<8x16xf32>
    %cst_38 = arith.constant 0.000000e+00 : f32
    %60 = vector.broadcast %cst_38 : f32 to vector<8x16xf32>
    %61 = arith.maximumf %59, %60 : vector<8x16xf32>
    %c0_39 = arith.constant 0 : index
    %c0_40 = arith.constant 0 : index
    %c0_41 = arith.constant 0 : index
    %62 = vector.load %arg9[%c0_39, %c0_40, %c0_41] : memref<1x8x16xf32, #tpu.memory_space<vmem>>, vector<1x8x16xf32>
    %63 = vector.shape_cast %62 : vector<1x8x16xf32> to vector<8x16xf32>
    %64 = vector.shape_cast %61 : vector<8x16xf32> to vector<1x8x16xf32>
    tpu.vector_store %arg9[%c0_39, %c0_40, %c0_41], %64 {strides = array<i32>} : memref<1x8x16xf32, #tpu.memory_space<vmem>>, vector<1x8x16xf32>,
    return
  }
  func.func @transform_0(%arg0: i32, %arg1: i32) -> (i32, i32, i32) {
    %c0_i32 = arith.constant 0 : i32
    %c0_i32_0 = arith.constant 0 : i32
    return %arg0, %c0_i32, %arg1 : i32, i32, i32
  }
  func.func @transform_1(%arg0: i32, %arg1: i32) -> (i32, i32, i32) {
    %c0_i32 = arith.constant 0 : i32
    %c0_i32_0 = arith.constant 0 : i32
    %c0_i32_1 = arith.constant 0 : i32
    %c0_i32_2 = arith.constant 0 : i32
    return %c0_i32, %c0_i32_0, %c0_i32_1 : i32, i32, i32
  }
  func.func @transform_2(%arg0: i32, %arg1: i32) -> (i32, i32) {
    %c0_i32 = arith.constant 0 : i32
    %c0_i32_0 = arith.constant 0 : i32
    %c0_i32_1 = arith.constant 0 : i32
    return %c0_i32, %c0_i32_0 : i32, i32
  }
  func.func @transform_3(%arg0: i32, %arg1: i32) -> (i32, i32, i32) {
    %c0_i32 = arith.constant 0 : i32
    %c0_i32_0 = arith.constant 0 : i32
    %c0_i32_1 = arith.constant 0 : i32
    %c0_i32_2 = arith.constant 0 : i32
    return %c0_i32, %c0_i32_0, %c0_i32_1 : i32, i32, i32
  }
  func.func @transform_4(%arg0: i32, %arg1: i32) -> (i32, i32) {
    %c0_i32 = arith.constant 0 : i32
    %c0_i32_0 = arith.constant 0 : i32
    %c0_i32_1 = arith.constant 0 : i32
    return %c0_i32, %c0_i32_0 : i32, i32
  }
  func.func @transform_5(%arg0: i32, %arg1: i32) -> (i32, i32) {
    %c0_i32 = arith.constant 0 : i32
    %c0_i32_0 = arith.constant 0 : i32
    %c0_i32_1 = arith.constant 0 : i32
    return %c0_i32, %c0_i32_0 : i32, i32
  }
  func.func @transform_6(%arg0: i32, %arg1: i32) -> (i32, i32) {
    %c0_i32 = arith.constant 0 : i32
    %c0_i32_0 = arith.constant 0 : i32
    %c0_i32_1 = arith.constant 0 : i32
    return %c0_i32, %c0_i32_0 : i32, i32
  }
  func.func @transform_7(%arg0: i32, %arg1: i32) -> (i32, i32, i32) {
    %c0_i32 = arith.constant 0 : i32
    %c0_i32_0 = arith.constant 0 : i32
    return %arg0, %c0_i32, %arg1 : i32, i32, i32
  }
}

</mosaic_0001>

<bundles_post_ra>
// kernel: tpu_custom_call.1
= control target key start
LH: loop header
LB: loop body
LE: loop exit
PB: predicated region body
PF: predicated region fallthrough
CT: control target
= control target key end

     0   :  { %12 = vsyncpa [#allocation3], 0  ;;  %s1419_s0 = inlined_call_operand.vmem [shape: f32[2,4,16], index: 0, kind: input, shape index: {}]   ;;  %s1420_s1 = inlined_call_operand.vmem [shape: f32[3,8,4], index: 1, kind: input, shape index: {}]   ;;  %s1421_s2 = inlined_call_operand.vmem [shape: f32[8,1], index: 2, kind: input, shape index: {}]   ;;  %s1422_s3 = inlined_call_operand.vmem [shape: f32[3,8,8], index: 3, kind: input, shape index: {}]   ;;  %s1423_s4 = inlined_call_operand.vmem [shape: f32[8,1], index: 4, kind: input, shape index: {}]   ;;  %s1424_s5 = inlined_call_operand.vmem [shape: f32[8,4], index: 5, kind: input, shape index: {}]   ;;  %s1425_s6 = inlined_call_operand.vmem [shape: f32[8,1], index: 6, kind: input, shape index: {}]   ;;  %s1426_s7 = inlined_call_operand.hbm [shape: f32[2,8,16], index: 7, kind: output, shape index: {}]  }
   0x1   :  { %14 = vsyncpa [#allocation3 + $0x1], 0  ;;  %s1240_s24 = smov 0   ;;  %s1242_s25 = smov 0  }
   0x2   :  { %s1244_s26 = smov 0   ;;  %s1246_s27 = smov 0  }
   0x3   :  { %s1248_s28 = smov 0   ;;  %s1250_s29 = smov 0  }
   0x4 LB: > { %s973_s30 = sadd.s32 4294967295, %s1191_s29   ;;  %s974_s8 = sadd.s32 4294967294, %s1191_s29   ;;  %s1191_s29 = sphi %s1250_s29, %s20_s29   ;;  %s1187_s28 = sphi %s1248_s28, %s1433_s28   ;;  %s1183_s27 = sphi %s1246_s27, %s1432_s27   ;;  %s1179_s26 = sphi %s1244_s26, %s1431_s26   ;;  %s1175_s25 = sphi %s1242_s25, %s1430_s25   ;;  %s1171_s24 = sphi %s1240_s24, %s1429_s24  }
   0x5   : > { %s32_s9 = sadd.s32 1, %s1187_s28  ;;  %s195_s10 = sadd.s32 1, %s1179_s26 }
   0x6   : > { %p34_p0 = scmp.ge.s32.totalorder %s32_s9, 2  ;;  %p205_p1 = scmp.ne.s32.totalorder %s1179_s26, %s1175_s25 }
   0x7   : > { %p206_p2 = scmp.eq.s32.totalorder %s973_s30, 1  ;;  %p211_p3 = scmp.ne.s32.totalorder %s1175_s25, %s1171_s24 }
   0x8   : > { %s1435_s9 = smov (%p34_p0, %s32_s9), 0  ;;  %p212_p5 = scmp.eq.s32.totalorder %s974_s8, 1 }
   0x9   : > { %p1280_p4 = por %p206_p2, %p205_p1  ;;  %s190_s12 = ssub.s32 %s1187_s28, %s1435_s9 }
   0xa   : > { %p977_p6 = scmp.ge.s32.totalorder %s1191_s29, 1  ;;  %p193_p7 = scmp.eq.s32.totalorder %s190_s12, 0 }
   0xb   : > { %p1287_p8 = por %p212_p5, %p211_p3  ;;  %p258_p9 = scmp.lt.s32.totalorder %s1191_s29, 3 }
   0xc   : > { %s1293_s14 = scalar_select %p193_p7, %s1179_s26, %s195_s10  }
   0xd   : > { %p259_p10 = pnand %p977_p6, %p258_p9 }
   0xe   : > { %p292_p11 = scmp.lt.s32.totalorder (!%p259_p10), %s1183_s27, 1  ;;  %v1193_v0 = vmov (!%p259_p10), 0.0   ;;  %s1194_s20 = smov (!%p259_p10), 8   ;;  %vm1195_vm0 = vmmov (!%p259_p10), 0   ;;  %v1196_v2 = vmov (!%p259_p10), 0   ;;  %vm305_vm1 = vcmask (!%p259_p10), 64512  }
   0xf   : > { %262 = sbr.rel (%p259_p10) target bundleno = 839 (0x347), region = 48  ;;  %1020 = vmatprep.subr.mxu1 (!%p259_p10), %v1193_v0  ;;  %1015 = vmatprep.subr.mxu0 (!%p259_p10), %v1193_v0  ;;  %vm317_vm2 = vcmask (!%p259_p10), 1043456   ;;  %vm313_vm3 = vcmask (!%p259_p10), 31744   ;;  %v307_v5 = vld [vmem:[%s1420_s1] sm:$0xff] (!%p259_p10)  ;;  %s1197_s23 = smov (!%p259_p10), 124   ;;  %v980_v7 = vld [vmem:[%s1420_s1 + $0x8] sm:$0xff] (!%p259_p10)  ;;  %v553_v13 = vlaneseq (!%p259_p10) }
  0x10   : > { %1017 = vmatprep.mubr.msk.f32.mxu0 (!%p259_p10), %vm1195_vm0, %v1193_v0  ;;  %1022 = vmatprep.mubr.msk.f32.mxu1 (!%p259_p10), %vm1195_vm0, %v1193_v0  ;;  %s1198_s30 = smov (!%p259_p10), 126   ;;  %v545_v6 = vld [vmem:[%s1421_s2] sm:$0xff] (!%p259_p10)  ;;  %v985_v10 = vld [vmem:[%s1420_s1 + $0x10] sm:$0xff] (!%p259_p10)  ;;  %v988_v29 = vld [vmem:[%s1422_s3 + $0x8] sm:$0xff] (!%p259_p10)  ;;  %s289_s17 = sand.u32 (!%p259_p10), 1, %s1175_s25   ;;  %vm885_vm6 = vcmask (!%p259_p10), 130048  }
  0x11   : > { %1111 = vset.pattern.permute.xlu1 (!%p259_p10), %v1196_v2  ;;  %1112 = vset.pattern.permute.xlu0 (!%p259_p10), %v1196_v2  ;;  %v554_v17 = vand.u32 (!%p259_p10), 127, %v553_v13  ;;  %v561_v24 = vld [vmem:[%s1422_s3] sm:$0xff] (!%p259_p10)  ;;  %v993_v32 = vld [vmem:[%s1422_s3 + $0x10] sm:$0xff] (!%p259_p10)  ;;  %s978_s18 = sshll.u32 (!%p259_p10), %s289_s17, 3  ;;  %s888_s12 = scalar_lea.sflag (!%p259_p10), [#allocation3], %s289_s17 }
  0x12   : > { %v801_v26 = vld [vmem:[%s1424_s5] sm:$0xff] (!%p259_p10) }
  0x13   : > { %vm555_vm4 = vcmp.lt.s32.totalorder (!%p259_p10), %v554_v17, 4  ;;  %v802_v27 = vld [vmem:[%s1425_s6] sm:$0xff] (!%p259_p10) }
  0x14   : > { %vm990_vm5 = vmneg (!%p259_p10), %vm555_vm4  ;;  %v793_v28 = vld [vmem:[%s1423_s4] sm:$0xff] (!%p259_p10) }
  0x16   : > { %s293_s15 = scalar_select %p292_p11, %s1183_s27, 1 }
  0x18   : > { %s979_s16 = sshll.u32 %s293_s15, 2 }
  0x19   : > { %s298_s19 = scalar_lea.vmem %s1419_s0, %s979_s16 }
  0x1a   : > { %v300_v1 = vld [vmem:[%s298_s19] sm:$0xf]  ;;  %s998_s19 = sshll.u32 %s1183_s27, 7  ;;  %s1199_s27 = smov [#allocation2]  }
  0x1b   : > { %302 = vrot.lane.b32.xlu0 %v300_v1, %s1194_s20  ;;  %s291_s20 = scalar_lea.vmem [#allocation2], %s978_s18  ;;  %s1372_s10 = scalar_lea.hbm %s1426_s7, %s998_s19 }
  0x1c   : > { %s902_s21 = sshll.u32 %s291_s20, 4  ;;  %s1374_s21 = int_to_ptr.vmem [resolvable:$true] %s902_s21 }
  0x8d   : > { %v303_v3 = vpop.permute.xlu0 %302 }
  0x8e   : > { %v306_v4 = vsel %vm305_vm1, 0.0, %v303_v3 }
  0x8f   : > { %467 = vrot.lane.b32.xlu1 %v306_v4, %s1197_s23  ;;  %311 = vrot.lane.b32.xlu0 %v306_v4, %s1198_s30 }
  0x90   : > { %1021 = vmatpush3.msk.msra.mxu1 %vm317_vm2, %v306_v4 }
  0x91   : > { %1023 = vmatmul.mubr.msk.f32.vlgmr.msra.gmra.mrb[0].mxu1 %vm313_vm3, %v307_v5  ;;  %1030 = vmatprep.subr.mxu1 %v1193_v0 }
  0x92   : > { %1032 = vmatprep.mubr.msk.f32.mxu1 %vm1195_vm0, %v1193_v0 }
  0x93   : > { %548 = vperm.xlu1 %1111, %v545_v6  }
 0x101   : > { %v312_v8 = vpop.permute.xlu0 %311  ;;  %v468_v9 = vpop.permute.xlu1 %467 }
 0x102   : > { %1016 = vmatpush3.msk.msra.mxu0 %vm317_vm2, %v312_v8 }
 0x103   : > { %1018 = vmatmul.mubr.msk.f32.vlgmr.msra.gmra.mrb[0].mxu0 %vm313_vm3, %v980_v7  ;;  %1025 = vmatprep.subr.mxu0 %v1193_v0 }
 0x104   : > { %1026 = vmatpush3.msk.msra.mxu0 %vm317_vm2, %v468_v9  ;;  %1027 = vmatprep.mubr.msk.f32.mxu0 %vm1195_vm0, %v1193_v0 }
 0x105   : > { %1035 = vmatprep.subr.mxu0 %v1193_v0 }
 0x107   : > { %1028 = vmatmul.mubr.msk.f32.vlgmr.msra.gmra.mrb[2].mxu0 %vm313_vm3, %v985_v10 }
 0x108   : > { %1037 = vmatprep.mubr.msk.f32.mxu0 %vm1195_vm0, %v1193_v0 }
 0x112   : > { %v549_v19 = vpop.permute.xlu1 %548 }
 0x164   : > { %v461_v11 = vpop.f32.mrb[0].mxu1 }
 0x165   : > { %v1024_v12 = vpop.f32.mrb[1].mxu1 }
 0x1d6   : > { %v386_v14 = vpop.f32.mrb[0].mxu0 }
 0x1d7   : > { %v462_v15 = vadd.f32 %v461_v11, %v386_v14  ;;  %v1019_v16 = vpop.f32.mrb[1].mxu0 }
 0x1da   : > { %v540_v18 = vpop.f32.mrb[2].mxu0 }
 0x1db   : > { %v544_v20 = vadd.f32 %v540_v18, %v462_v15  ;;  %v1029_v21 = vpop.f32.mrb[3].mxu0 }
 0x1dd   : > { %v551_v22 = vadd.f32 %v549_v19, %v544_v20 }
 0x1df   : > { %v552_v23 = vmax.f32 %v551_v22, 0.0 }
 0x1e1   : > { %1036 = vmatpush3.msk.msra.mxu0 %vm990_vm5, %v552_v23  ;;  %v560_v25 = vsel %vm555_vm4, 0.0, %v552_v23 }
 0x1e2   : > { %1038 = vmatmul.mubr.msk.f32.vlgmr.msra.gmra.mrb[4].mxu0 %vm305_vm1, %v561_v24  ;;  %716 = vrot.lane.b32.xlu1 %v560_v25, %s1197_s23  ;;  %s1113_s23 = scalar_lea.vmem %s1374_s21, 128 }
 0x1e3   : > { %565 = vrot.lane.b32.xlu0 %v560_v25, %s1198_s30  ;;  %1045 = vmatprep.subr.mxu0 %v1193_v0  ;;  %p1114_p12 = scmp.ne.s32.totalorder %s1374_s21, %s1113_s23  ;;  %s1117_s30 = sshll.u32 %s1199_s27, 4  ;;  %s1118_s30 = int_to_ptr.vmem [resolvable:$false] %s1117_s30 }
 0x1e4   : > { %1046 = vmatpush3.msk.msra.mxu0 %vm317_vm2, %v300_v1  ;;  %1047 = vmatprep.mubr.msk.f32.mxu0 %vm1195_vm0, %v1193_v0  ;;  %s1119_s15 = scalar_lea.vmem %s1118_s30, 256  ;;  %p1120_p1 = scmp.lt.s32.totalorder %s1374_s21, %s1118_s30 }
 0x1e5   : > { %p1115_p13 = pnand %p1114_p12, %p1280_p4  ;;  %p1121_p2 = scmp.lt.s32.totalorder %s1119_s15, %s1113_s23 }
 0x1e6   : > { %1048 = vmatmul.mubr.msk.f32.vlgmr.msra.gmra.mrb[6].mxu0 %vm313_vm3, %v801_v26  ;;  %805 = vperm.xlu1 %1111, %v802_v27  }
 0x1e7   : > { %796 = vperm.xlu0 %1112, %v793_v28   ;;  %p1116_p0 = pneg %p1115_p13  ;;  %p1122_p3 = por %p1121_p2, %p1120_p1 }
 0x1e9   : > { %p1123_p5 = pnand %p1122_p3, %p1116_p0 }
 0x254   : > { %v717_v31 = vpop.permute.xlu1 %716 }
 0x255   : > { %v566_v30 = vpop.permute.xlu0 %565 }
 0x256   : > { %1031 = vmatpush3.msra.mxu1 %v566_v30 }
 0x257   : > { %1033 = vmatmul.mubr.msk.f32.vlgmr.msra.gmra.mrb[2].mxu1 %vm305_vm1, %v988_v29  ;;  %1040 = vmatprep.subr.mxu1 %v1193_v0 }
 0x258   : > { %1041 = vmatpush3.msra.mxu1 %v717_v31  ;;  %1042 = vmatprep.mubr.msk.f32.mxu1 %vm1195_vm0, %v1193_v0 }
 0x25b   : > { %1043 = vmatmul.mubr.msk.f32.vlgmr.msra.gmra.mrb[4].mxu1 %vm305_vm1, %v993_v32 }
 0x265   : > { %v806_v45 = vpop.permute.xlu1 %805 }
 0x266   : > { %v797_v41 = vpop.permute.xlu0 %796 }
 0x2b5   : > { %v710_v33 = vpop.f32.mrb[4].mxu0 }
 0x2b6   : > { %v1039_v34 = vpop.f32.mrb[5].mxu0 }
 0x2b9   : > { %v879_v35 = vpop.f32.mrb[6].mxu0 }
 0x2ba   : > { %v1049_v36 = vpop.f32.mrb[7].mxu0  ;;  %v880_v46 = vadd.f32 %v879_v35, %v806_v45 }
 0x32a   : > { %v637_v37 = vpop.f32.mrb[2].mxu1 }
 0x32b   : > { %v711_v38 = vadd.f32 %v710_v33, %v637_v37  ;;  %v1034_v39 = vpop.f32.mrb[3].mxu1 }
 0x32e   : > { %v788_v40 = vpop.f32.mrb[4].mxu1 }
 0x32f   : > { %v792_v42 = vadd.f32 %v788_v40, %v711_v38  ;;  %v1044_v43 = vpop.f32.mrb[5].mxu1 }
 0x331   : > { %v799_v44 = vadd.f32 %v797_v41, %v792_v42 }
 0x333   : > { %v800_v47 = vmax.f32 %v799_v44, 0.0 }
 0x335   : > { %v883_v48 = vadd.f32 %v880_v46, %v800_v47 }
 0x337   : > { %v884_v49 = vmax.f32 %v883_v48, 0.0 }
 0x339   : > { %886 = vst.msk [vmem:[%s291_s20] sm:$0xff] %vm885_vm6, %v884_v49 }
 0x33a   : > { %1126 = shalt.err (!%p1123_p5)
}
 0x33b   : > { %s1127_s16 = scalar_lea.hbm %s1372_s10, 128  ;;  %s1131_s19 = scalar_lea.hbm %s1426_s7, 256 }
 0x33c   : > { %p1128_p6 = scmp.ne.s32.totalorder %s1372_s10, %s1127_s16  ;;  %p1132_p10 = scmp.lt.u32.totalorder %s1372_s10, %s1426_s7 }
 0x33d   : > { %p1133_p11 = scmp.lt.u32.totalorder %s1131_s19, %s1127_s16  ;;  %p1135_p13 = scmp.lt.u32.totalorder %s1127_s16, %s1372_s10 }
 0x33e   : > { %p1129_p7 = pnand %p1128_p6, %p1280_p4 }
 0x33f   : > { %p1134_p12 = por %p1133_p11, %p1132_p10 }
 0x340   : > { %p1130_p9 = pneg %p1129_p7 }
 0x341   : > { %p1136_p0 = por %p1135_p13, %p1134_p12 }
 0x343   : > { %p1137_p1 = pnand %p1136_p0, %p1130_p9 }
 0x345   : > { %1140 = shalt.err (!%p1137_p1)
}
 0x346   : > { %1050 = dma.vmem_to_hbm [thread:$0]  (%p1280_p4), %s1374_s21, 128, %s1372_s10, %s888_s12  }
 0x347 PF: > { %p1056_p2 = scmp.ge.s32.totalorder %s1191_s29, 2  ;;  %s914_s8 = sand.u32 1, %s1171_s24  }
 0x348   : > { %s915_s23 = scalar_lea.sflag [#allocation3], %s914_s8 }
 0x349   : > { %p1053_p3 = pnand %p1056_p2, %p1287_p8 }
 0x34b   : > { %1166 = dma.done.wait (!%p1053_p3), %s915_s23, 128  }
 0x34c   : > { %1168 = vsyncadd (!%p1053_p3), %s915_s23, 4294967168  ;;  %s20_s29 = sadd.s32 1, %s1191_s29   ;;  %s1429_s24 = smov %s1175_s25 }
 0x34d   : > { %p17_p5 = scmp.ge.s32.totalorder %s20_s29, 4   ;;  %s1430_s25 = smov %s1179_s26 }
 0x34e   : > { %s1431_s26 = smov %s1293_s14  ;;  %s1432_s27 = smov %s1187_s28 }
 0x34f   : > { %s1433_s28 = smov %s1435_s9  ;;  %19 = sbr.rel (!%p17_p5) target bundleno = 4 (0x4), region = 87 }
 0x356   :  { %920 = vsyncpa [#allocation3], 1 }
 0x357   :  { %922 = vsyncpa [#allocation3 + $0x1], 1 }

</bundles_post_ra>
